<compile_context>
chip_gen: v5e
topology: v5e:2x2
jax: 0.10.0
libtpu: 0.0.40
codegen_flags: <defaults>
</compile_context>

<pallas_src>
import functools
import math

import jax
import jax.numpy as jnp
from jax.experimental import pallas as pl
from jax.experimental.pallas import tpu as pltpu


# ------------------------------ fused Pallas kernel --------------------------

def _fused_encoder_kernel(x_ref, m1_ref, b1_ref, m2_ref, b2_ref, wo_ref,
                          bo_ref, pe_ref, g_ref, beta_ref, o_ref,
                          *, T1, T2, xscale, eps):
    """One batch element per grid step; everything stays on-chip.

    conv1/conv2 (3x3, stride 2, VALID) == sum over kh of
        (row-decimation selection matmul) @ (banded weight matrix M[kh])
    followed by bias + ReLU.  Then Linear -> *sqrt(C) + PE -> LayerNorm.
    """
    x = x_ref[0]                                   # (T, F) f32
    T = x.shape[0]

    def dec(n_out, n_in, offset):
        # selection[i, j] = 1.0 iff j == 2*i + offset  (stride-2 row decimation)
        r = jax.lax.broadcasted_iota(jnp.int32, (n_out, n_in), 0)
        c = jax.lax.broadcasted_iota(jnp.int32, (n_out, n_in), 1)
        return (c == 2 * r + offset).astype(jnp.float32)

    # ---- Conv2d(1, C, 3, stride 2) + ReLU  ->  h1[t1, f1*C + c]
    acc1 = None
    for kh in range(3):
        xd = jnp.dot(dec(T1, T, kh), x, preferred_element_type=jnp.float32)
        p = jnp.dot(xd, m1_ref[kh], preferred_element_type=jnp.float32)
        acc1 = p if acc1 is None else acc1 + p
    h1 = jnp.maximum(acc1 + b1_ref[...], 0.0)      # (T1, F1*C), VMEM-resident

    # ---- Conv2d(C, C, 3, stride 2) + ReLU  ->  h2[t2, f2*C + c]
    acc2 = None
    for kh in range(3):
        hd = jnp.dot(dec(T2, T1, kh), h1, preferred_element_type=jnp.float32)
        p = jnp.dot(hd, m2_ref[kh], preferred_element_type=jnp.float32)
        acc2 = p if acc2 is None else acc2 + p
    h2 = jnp.maximum(acc2 + b2_ref[...], 0.0)      # (T2, F2*C)

    # ---- Linear(C*F2, C) -> x*sqrt(C) + pos_emb -> LayerNorm(eps=1e-12)
    h = jnp.dot(h2, wo_ref[...], preferred_element_type=jnp.float32) + bo_ref[...]
    h = h * xscale + pe_ref[...]
    mean = jnp.mean(h, axis=-1, keepdims=True)
    var = jnp.mean(jnp.square(h - mean), axis=-1, keepdims=True)
    hn = (h - mean) * jax.lax.rsqrt(var + eps)     # rsqrt -> EUP slot
    o_ref[0] = hn * g_ref[...] + beta_ref[...]


# ------------------------------ weight packing --------------------------------

def pack_params(params, F, F1, F2):
    """Repack torch-layout conv/linear weights into banded matmul operands.

    (Done once per parameter set; in a real deployment this is precomputed.)
    """
    w1 = params["w1"]          # (C, 1, 3, 3)  torch Conv2d(1, C, 3, stride=2)
    w2 = params["w2"]          # (C, C, 3, 3)  torch Conv2d(C, C, 3, stride=2)
    wo = params["wo"]          # (C*F2, C)     W^T, rows ordered (c, f2) like torch flatten
    C = w1.shape[0]

    # M1[kh, f_in, f1*C + c] = w1[c, 0, kh, f_in - 2*f1]  if 0 <= f_in - 2*f1 < 3
    m1 = jnp.zeros((3, F, F1 * C), jnp.float32)
    for kh in range(3):
        for f1 in range(F1):
            for kw in range(3):
                m1 = m1.at[kh, 2 * f1 + kw, f1 * C:(f1 + 1) * C].set(w1[:, 0, kh, kw])

    # M2[kh, f1*C + ci, f2*C + co] = w2[co, ci, kh, f1 - 2*f2]  if 0 <= f1 - 2*f2 < 3
    m2 = jnp.zeros((3, F1 * C, F2 * C), jnp.float32)
    for kh in range(3):
        for f2 in range(F2):
            for kw in range(3):
                f1 = 2 * f2 + kw
                m2 = m2.at[kh, f1 * C:(f1 + 1) * C, f2 * C:(f2 + 1) * C].set(
                    w2[:, :, kh, kw].T)

    # Reorder linear rows from torch (c, f2) ordering to the kernel's (f2, c) ordering.
    wo_packed = wo.reshape(C, F2, C).transpose(1, 0, 2).reshape(F2 * C, C)

    return dict(
        m1=m1, b1=jnp.tile(params["b1"], F1).reshape(1, F1 * C),
        m2=m2, b2=jnp.tile(params["b2"], F2).reshape(1, F2 * C),
        wo=wo_packed, bo=params["bo"].reshape(1, C),
        gamma=params["gamma"].reshape(1, C), beta=params["beta"].reshape(1, C))


def sinusoidal_pe(length, d_model):
    pos = jnp.arange(length, dtype=jnp.float32)[:, None]
    div = jnp.exp(jnp.arange(0, d_model, 2, dtype=jnp.float32)
                  * -(math.log(10000.0) / d_model))
    pe = jnp.zeros((length, d_model), jnp.float32)
    pe = pe.at[:, 0::2].set(jnp.sin(pos * div))
    pe = pe.at[:, 1::2].set(jnp.cos(pos * div))
    return pe


# ------------------------------ forward wrapper --------------------------------

def base_encoder_forward(xs, xs_lens, params):
    """xs: (B, T, F) float32; xs_lens: (B,) int32  ->  (B, T'', C)."""
    # TODO(synk): the pad mask is computed in the PyTorch forward but is not part of the
    # returned tensor (`return xs`); it is dropped here per the performance review.
    del xs_lens
    B, T, F = xs.shape
    C = params["w1"].shape[0]
    T1, F1 = (T - 3) // 2 + 1, (F - 3) // 2 + 1      # after conv1 (stride 2, VALID)
    T2, F2 = (T1 - 3) // 2 + 1, (F1 - 3) // 2 + 1    # after conv2

    pk = pack_params(params, F, F1, F2)
    pe = sinusoidal_pe(T2, C)                        # single (T2, C) table, not tiled by B

    kernel = functools.partial(_fused_encoder_kernel, T1=T1, T2=T2,
                               xscale=math.sqrt(C), eps=1e-12)
    rep2 = lambda b: (0, 0)        # constant block index -> weights stay VMEM-resident
    rep3 = lambda b: (0, 0, 0)

    return pl.pallas_call(
        kernel,
        out_shape=jax.ShapeDtypeStruct((B, T2, C), jnp.float32),
        grid=(B,),
        in_specs=[
            pl.BlockSpec((1, T, F), lambda b: (b, 0, 0)),    # xs (per-batch tile)
            pl.BlockSpec((3, F, F1 * C), rep3),              # conv1 banded weights
            pl.BlockSpec((1, F1 * C), rep2),                 # conv1 bias (tiled over f1)
            pl.BlockSpec((3, F1 * C, F2 * C), rep3),         # conv2 banded weights
            pl.BlockSpec((1, F2 * C), rep2),                 # conv2 bias
            pl.BlockSpec((F2 * C, C), rep2),                 # output linear W^T (permuted)
            pl.BlockSpec((1, C), rep2),                      # output linear bias
            pl.BlockSpec((T2, C), rep2),                     # positional encoding
            pl.BlockSpec((1, C), rep2),                      # after_norm gamma
            pl.BlockSpec((1, C), rep2),                      # after_norm beta
        ],
        out_specs=pl.BlockSpec((1, T2, C), lambda b: (b, 0, 0)),
        compiler_params=pltpu.CompilerParams(
            dimension_semantics=("parallel",)),              # megacore over batch
    )(xs, pk["m1"], pk["b1"], pk["m2"], pk["b2"], pk["wo"], pk["bo"],
      pe, pk["gamma"], pk["beta"])


# --------------------------- pure-JAX reference (ground truth) -----------------

def reference_forward(xs, params):
    hp = jax.lax.Precision.HIGHEST
    x = xs[:, None, :, :]                                    # (B,1,T,F) NCHW
    h = jax.lax.conv_general_dilated(
        x, params["w1"], (2, 2), "VALID",
        dimension_numbers=("NCHW", "OIHW", "NCHW"),
        precision=hp) + params["b1"][None, :, None, None]
    h = jnp.maximum(h, 0.0)
    h = jax.lax.conv_general_dilated(
        h, params["w2"], (2, 2), "VALID",
        dimension_numbers=("NCHW", "OIHW", "NCHW"),
        precision=hp) + params["b2"][None, :, None, None]
    h = jnp.maximum(h, 0.0)
    b, c, t, f = h.shape
    h = h.transpose(0, 2, 1, 3).reshape(b, t, c * f)         # torch transpose(1,2).view
    h = jnp.dot(h, params["wo"], precision=hp) + params["bo"]
    h = h * math.sqrt(c) + sinusoidal_pe(t, c)[None]
    mean = h.mean(-1, keepdims=True)
    var = ((h - mean) ** 2).mean(-1, keepdims=True)
    h = (h - mean) / jnp.sqrt(var + 1e-12)
    return h * params["gamma"] + params["beta"]


# --------------------------------- main -----------------------------------------

if __name__ == "__main__":
    key = jax.random.PRNGKey(0)
    B, T, F = 2, 16, 16         # batch, frames, input_size
    C = 32                      # output_size (d_model)
    F2 = ((F - 1) // 2 - 1) // 2  # = 3, frequency dim after Conv2dSubsampling4

    keys = jax.random.split(key, 7)
    params = {
        # torch Conv2d(1, C, 3, stride=2) weight/bias
        "w1": 0.1 * jax.random.normal(keys[1], (C, 1, 3, 3), jnp.float32),
        "b1": 0.1 * jax.random.normal(keys[2], (C,), jnp.float32),
        # torch Conv2d(C, C, 3, stride=2) weight/bias
        "w2": 0.1 * jax.random.normal(keys[3], (C, C, 3, 3), jnp.float32),
        "b2": 0.1 * jax.random.normal(keys[4], (C,), jnp.float32),
        # output Linear(C*F2, C): stored as W^T, rows ordered (c, f2) like torch flatten
        "wo": 0.1 * jax.random.normal(keys[5], (C * F2, C), jnp.float32),
        "bo": 0.1 * jax.random.normal(keys[6], (C,), jnp.float32),
        # after_norm LayerNorm(C, eps=1e-12) init
        "gamma": jnp.ones((C,), jnp.float32),
        "beta": jnp.zeros((C,), jnp.float32),
    }

    xs = jax.random.normal(keys[0], (B, T, F), jnp.float32)
    xs_lens = jnp.array([16, 12], jnp.int32)

    fwd = jax.jit(base_encoder_forward)
    out = jax.block_until_ready(fwd(xs, xs_lens, params))
    ref = jax.block_until_ready(reference_forward(xs, params))

    T2 = ((T - 1) // 2 - 1) // 2
    assert out.shape == (B, T2, C), out.shape
    # Kernel matmuls use DEFAULT (MXU-native bf16-pass) precision with f32 accumulation,
    # so compare against the f32 HIGHEST reference with a correspondingly sized tolerance.
    err = float(jnp.max(jnp.abs(out - ref)))
    assert err < 3e-2, err
    print("KERNEL_OK")
</pallas_src>

<mosaic_0001>
module attributes {stable_mosaic.version = 11 : i64} {
  func.func @_fused_encoder_kernel(%arg0: i32, %arg1: memref<1x16x16xf32, #tpu.memory_space<vmem>>, %arg2: memref<3x16x224xf32, #tpu.memory_space<vmem>>, %arg3: memref<1x224xf32, #tpu.memory_space<vmem>>, %arg4: memref<3x224x96xf32, #tpu.memory_space<vmem>>, %arg5: memref<1x96xf32, #tpu.memory_space<vmem>>, %arg6: memref<96x32xf32, #tpu.memory_space<vmem>>, %arg7: memref<1x32xf32, #tpu.memory_space<vmem>>, %arg8: memref<3x32xf32, #tpu.memory_space<vmem>>, %arg9: memref<1x32xf32, #tpu.memory_space<vmem>>, %arg10: memref<1x32xf32, #tpu.memory_space<vmem>>, %arg11: memref<1x3x32xf32, #tpu.memory_space<vmem>>) attributes {dimension_semantics = [#tpu.dimension_semantics<parallel>], iteration_bounds = array<i64: 2>, scalar_prefetch = 0 : i64, scratch_operands = 0 : i64, tpu.core_type = #tpu.core_type<tc>, window_params = [{transform_indices = @transform_0, window_bounds = array<i64: 1, 16, 16>}, {pipeline_mode = #tpu.pipeline_mode<synchronous>, transform_indices = @transform_1, window_bounds = array<i64: 3, 16, 224>}, {pipeline_mode = #tpu.pipeline_mode<synchronous>, transform_indices = @transform_2, window_bounds = array<i64: 1, 224>}, {pipeline_mode = #tpu.pipeline_mode<synchronous>, transform_indices = @transform_3, window_bounds = array<i64: 3, 224, 96>}, {pipeline_mode = #tpu.pipeline_mode<synchronous>, transform_indices = @transform_4, window_bounds = array<i64: 1, 96>}, {pipeline_mode = #tpu.pipeline_mode<synchronous>, transform_indices = @transform_5, window_bounds = array<i64: 96, 32>}, {pipeline_mode = #tpu.pipeline_mode<synchronous>, transform_indices = @transform_6, window_bounds = array<i64: 1, 32>}, {pipeline_mode = #tpu.pipeline_mode<synchronous>, transform_indices = @transform_7, window_bounds = array<i64: 3, 32>}, {pipeline_mode = #tpu.pipeline_mode<synchronous>, transform_indices = @transform_8, window_bounds = array<i64: 1, 32>}, {pipeline_mode = #tpu.pipeline_mode<synchronous>, transform_indices = @transform_9, window_bounds = array<i64: 1, 32>}, {transform_indices = @transform_10, window_bounds = array<i64: 1, 3, 32>}]} {
    %c0 = arith.constant 0 : index
    %c0_0 = arith.constant 0 : index
    %c0_1 = arith.constant 0 : index
    %0 = vector.load %arg1[%c0, %c0_0, %c0_1] : memref<1x16x16xf32, #tpu.memory_space<vmem>>, vector<1x16x16xf32>
    %1 = vector.shape_cast %0 : vector<1x16x16xf32> to vector<16x16xf32>
    %2 = tpu.iota {dimensions = array<i32: 0>} : vector<7x16xi32>
    %3 = tpu.iota {dimensions = array<i32: 1>} : vector<7x16xi32>
    %c2_i32 = arith.constant 2 : i32
    %4 = vector.broadcast %c2_i32 : i32 to vector<7x16xi32>
    %5 = arith.muli %4, %2 : vector<7x16xi32>
    %c0_i32 = arith.constant 0 : i32
    %6 = vector.broadcast %c0_i32 : i32 to vector<7x16xi32>
    %7 = arith.addi %5, %6 : vector<7x16xi32>
    %8 = arith.cmpi eq, %3, %7 : vector<7x16xi32>
    %9 = arith.extui %8 : vector<7x16xi1> to vector<7x16xi32>
    %10 = arith.sitofp %9 : vector<7x16xi32> to vector<7x16xf32>
    %cst = arith.constant dense<0.000000e+00> : vector<7x16xf32>
    %11 = tpu.matmul %10, %1, %cst {dimension_numbers = #tpu.dot_dimension_numbers<[1], [0], [0], [1], [0, 0, 1, 1], [], []>} : vector<7x16xf32>, vector<16x16xf32>, vector<7x16xf32> -> vector<7x16xf32>
    %c0_2 = arith.constant 0 : index
    %c0_3 = arith.constant 0 : index
    %c0_4 = arith.constant 0 : index
    %12 = vector.load %arg2[%c0_2, %c0_3, %c0_4] : memref<3x16x224xf32, #tpu.memory_space<vmem>>, vector<1x16x224xf32>
    %13 = vector.shape_cast %12 : vector<1x16x224xf32> to vector<16x224xf32>
    %cst_5 = arith.constant dense<0.000000e+00> : vector<7x224xf32>
    %14 = tpu.matmul %11, %13, %cst_5 {dimension_numbers = #tpu.dot_dimension_numbers<[1], [0], [0], [1], [0, 0, 1, 1], [], []>} : vector<7x16xf32>, vector<16x224xf32>, vector<7x224xf32> -> vector<7x224xf32>
    %15 = tpu.iota {dimensions = array<i32: 0>} : vector<7x16xi32>
    %16 = tpu.iota {dimensions = array<i32: 1>} : vector<7x16xi32>
    %c2_i32_6 = arith.constant 2 : i32
    %17 = vector.broadcast %c2_i32_6 : i32 to vector<7x16xi32>
    %18 = arith.muli %17, %15 : vector<7x16xi32>
    %c1_i32 = arith.constant 1 : i32
    %19 = vector.broadcast %c1_i32 : i32 to vector<7x16xi32>
    %20 = arith.addi %18, %19 : vector<7x16xi32>
    %21 = arith.cmpi eq, %16, %20 : vector<7x16xi32>
    %22 = arith.extui %21 : vector<7x16xi1> to vector<7x16xi32>
    %23 = arith.sitofp %22 : vector<7x16xi32> to vector<7x16xf32>
    %cst_7 = arith.constant dense<0.000000e+00> : vector<7x16xf32>
    %24 = tpu.matmul %23, %1, %cst_7 {dimension_numbers = #tpu.dot_dimension_numbers<[1], [0], [0], [1], [0, 0, 1, 1], [], []>} : vector<7x16xf32>, vector<16x16xf32>, vector<7x16xf32> -> vector<7x16xf32>
    %c1 = arith.constant 1 : index
    %c0_8 = arith.constant 0 : index
    %c0_9 = arith.constant 0 : index
    %25 = vector.load %arg2[%c1, %c0_8, %c0_9] : memref<3x16x224xf32, #tpu.memory_space<vmem>>, vector<1x16x224xf32>
    %26 = vector.shape_cast %25 : vector<1x16x224xf32> to vector<16x224xf32>
    %cst_10 = arith.constant dense<0.000000e+00> : vector<7x224xf32>
    %27 = tpu.matmul %24, %26, %cst_10 {dimension_numbers = #tpu.dot_dimension_numbers<[1], [0], [0], [1], [0, 0, 1, 1], [], []>} : vector<7x16xf32>, vector<16x224xf32>, vector<7x224xf32> -> vector<7x224xf32>
    %28 = arith.addf %14, %27 : vector<7x224xf32>
    %29 = tpu.iota {dimensions = array<i32: 0>} : vector<7x16xi32>
    %30 = tpu.iota {dimensions = array<i32: 1>} : vector<7x16xi32>
    %c2_i32_11 = arith.constant 2 : i32
    %31 = vector.broadcast %c2_i32_11 : i32 to vector<7x16xi32>
    %32 = arith.muli %31, %29 : vector<7x16xi32>
    %c2_i32_12 = arith.constant 2 : i32
    %33 = vector.broadcast %c2_i32_12 : i32 to vector<7x16xi32>
    %34 = arith.addi %32, %33 : vector<7x16xi32>
    %35 = arith.cmpi eq, %30, %34 : vector<7x16xi32>
    %36 = arith.extui %35 : vector<7x16xi1> to vector<7x16xi32>
    %37 = arith.sitofp %36 : vector<7x16xi32> to vector<7x16xf32>
    %cst_13 = arith.constant dense<0.000000e+00> : vector<7x16xf32>
    %38 = tpu.matmul %37, %1, %cst_13 {dimension_numbers = #tpu.dot_dimension_numbers<[1], [0], [0], [1], [0, 0, 1, 1], [], []>} : vector<7x16xf32>, vector<16x16xf32>, vector<7x16xf32> -> vector<7x16xf32>
    %c2 = arith.constant 2 : index
    %c0_14 = arith.constant 0 : index
    %c0_15 = arith.constant 0 : index
    %39 = vector.load %arg2[%c2, %c0_14, %c0_15] : memref<3x16x224xf32, #tpu.memory_space<vmem>>, vector<1x16x224xf32>
    %40 = vector.shape_cast %39 : vector<1x16x224xf32> to vector<16x224xf32>
    %cst_16 = arith.constant dense<0.000000e+00> : vector<7x224xf32>
    %41 = tpu.matmul %38, %40, %cst_16 {dimension_numbers = #tpu.dot_dimension_numbers<[1], [0], [0], [1], [0, 0, 1, 1], [], []>} : vector<7x16xf32>, vector<16x224xf32>, vector<7x224xf32> -> vector<7x224xf32>
    %42 = arith.addf %28, %41 : vector<7x224xf32>
    %c0_17 = arith.constant 0 : index
    %c0_18 = arith.constant 0 : index
    %43 = vector.load %arg3[%c0_17, %c0_18] : memref<1x224xf32, #tpu.memory_space<vmem>>, vector<1x224xf32>
    %44 = vector.broadcast %43 : vector<1x224xf32> to vector<7x224xf32>
    %45 = arith.addf %42, %44 : vector<7x224xf32>
    %cst_19 = arith.constant 0.000000e+00 : f32
    %46 = vector.broadcast %cst_19 : f32 to vector<7x224xf32>
    %47 = arith.maximumf %45, %46 : vector<7x224xf32>
    %48 = tpu.iota {dimensions = array<i32: 0>} : vector<3x7xi32>
    %49 = tpu.iota {dimensions = array<i32: 1>} : vector<3x7xi32>
    %c2_i32_20 = arith.constant 2 : i32
    %50 = vector.broadcast %c2_i32_20 : i32 to vector<3x7xi32>
    %51 = arith.muli %50, %48 : vector<3x7xi32>
    %c0_i32_21 = arith.constant 0 : i32
    %52 = vector.broadcast %c0_i32_21 : i32 to vector<3x7xi32>
    %53 = arith.addi %51, %52 : vector<3x7xi32>
    %54 = arith.cmpi eq, %49, %53 : vector<3x7xi32>
    %55 = arith.extui %54 : vector<3x7xi1> to vector<3x7xi32>
    %56 = arith.sitofp %55 : vector<3x7xi32> to vector<3x7xf32>
    %cst_22 = arith.constant dense<0.000000e+00> : vector<3x224xf32>
    %57 = tpu.matmul %56, %47, %cst_22 {dimension_numbers = #tpu.dot_dimension_numbers<[1], [0], [0], [1], [0, 0, 1, 1], [], []>} : vector<3x7xf32>, vector<7x224xf32>, vector<3x224xf32> -> vector<3x224xf32>
    %c0_23 = arith.constant 0 : index
    %c0_24 = arith.constant 0 : index
    %c0_25 = arith.constant 0 : index
    %58 = vector.load %arg4[%c0_23, %c0_24, %c0_25] : memref<3x224x96xf32, #tpu.memory_space<vmem>>, vector<1x224x96xf32>
    %59 = vector.shape_cast %58 : vector<1x224x96xf32> to vector<224x96xf32>
    %cst_26 = arith.constant dense<0.000000e+00> : vector<3x96xf32>
    %60 = tpu.matmul %57, %59, %cst_26 {dimension_numbers = #tpu.dot_dimension_numbers<[1], [0], [0], [1], [0, 0, 1, 1], [], []>} : vector<3x224xf32>, vector<224x96xf32>, vector<3x96xf32> -> vector<3x96xf32>
    %61 = tpu.iota {dimensions = array<i32: 0>} : vector<3x7xi32>
    %62 = tpu.iota {dimensions = array<i32: 1>} : vector<3x7xi32>
    %c2_i32_27 = arith.constant 2 : i32
    %63 = vector.broadcast %c2_i32_27 : i32 to vector<3x7xi32>
    %64 = arith.muli %63, %61 : vector<3x7xi32>
    %c1_i32_28 = arith.constant 1 : i32
    %65 = vector.broadcast %c1_i32_28 : i32 to vector<3x7xi32>
    %66 = arith.addi %64, %65 : vector<3x7xi32>
    %67 = arith.cmpi eq, %62, %66 : vector<3x7xi32>
    %68 = arith.extui %67 : vector<3x7xi1> to vector<3x7xi32>
    %69 = arith.sitofp %68 : vector<3x7xi32> to vector<3x7xf32>
    %cst_29 = arith.constant dense<0.000000e+00> : vector<3x224xf32>
    %70 = tpu.matmul %69, %47, %cst_29 {dimension_numbers = #tpu.dot_dimension_numbers<[1], [0], [0], [1], [0, 0, 1, 1], [], []>} : vector<3x7xf32>, vector<7x224xf32>, vector<3x224xf32> -> vector<3x224xf32>
    %c1_30 = arith.constant 1 : index
    %c0_31 = arith.constant 0 : index
    %c0_32 = arith.constant 0 : index
    %71 = vector.load %arg4[%c1_30, %c0_31, %c0_32] : memref<3x224x96xf32, #tpu.memory_space<vmem>>, vector<1x224x96xf32>
    %72 = vector.shape_cast %71 : vector<1x224x96xf32> to vector<224x96xf32>
    %cst_33 = arith.constant dense<0.000000e+00> : vector<3x96xf32>
    %73 = tpu.matmul %70, %72, %cst_33 {dimension_numbers = #tpu.dot_dimension_numbers<[1], [0], [0], [1], [0, 0, 1, 1], [], []>} : vector<3x224xf32>, vector<224x96xf32>, vector<3x96xf32> -> vector<3x96xf32>
    %74 = arith.addf %60, %73 : vector<3x96xf32>
    %75 = tpu.iota {dimensions = array<i32: 0>} : vector<3x7xi32>
    %76 = tpu.iota {dimensions = array<i32: 1>} : vector<3x7xi32>
    %c2_i32_34 = arith.constant 2 : i32
    %77 = vector.broadcast %c2_i32_34 : i32 to vector<3x7xi32>
    %78 = arith.muli %77, %75 : vector<3x7xi32>
    %c2_i32_35 = arith.constant 2 : i32
    %79 = vector.broadcast %c2_i32_35 : i32 to vector<3x7xi32>
    %80 = arith.addi %78, %79 : vector<3x7xi32>
    %81 = arith.cmpi eq, %76, %80 : vector<3x7xi32>
    %82 = arith.extui %81 : vector<3x7xi1> to vector<3x7xi32>
    %83 = arith.sitofp %82 : vector<3x7xi32> to vector<3x7xf32>
    %cst_36 = arith.constant dense<0.000000e+00> : vector<3x224xf32>
    %84 = tpu.matmul %83, %47, %cst_36 {dimension_numbers = #tpu.dot_dimension_numbers<[1], [0], [0], [1], [0, 0, 1, 1], [], []>} : vector<3x7xf32>, vector<7x224xf32>, vector<3x224xf32> -> vector<3x224xf32>
    %c2_37 = arith.constant 2 : index
    %c0_38 = arith.constant 0 : index
    %c0_39 = arith.constant 0 : index
    %85 = vector.load %arg4[%c2_37, %c0_38, %c0_39] : memref<3x224x96xf32, #tpu.memory_space<vmem>>, vector<1x224x96xf32>
    %86 = vector.shape_cast %85 : vector<1x224x96xf32> to vector<224x96xf32>
    %cst_40 = arith.constant dense<0.000000e+00> : vector<3x96xf32>
    %87 = tpu.matmul %84, %86, %cst_40 {dimension_numbers = #tpu.dot_dimension_numbers<[1], [0], [0], [1], [0, 0, 1, 1], [], []>} : vector<3x224xf32>, vector<224x96xf32>, vector<3x96xf32> -> vector<3x96xf32>
    %88 = arith.addf %74, %87 : vector<3x96xf32>
    %c0_41 = arith.constant 0 : index
    %c0_42 = arith.constant 0 : index
    %89 = vector.load %arg5[%c0_41, %c0_42] : memref<1x96xf32, #tpu.memory_space<vmem>>, vector<1x96xf32>
    %90 = vector.broadcast %89 : vector<1x96xf32> to vector<3x96xf32>
    %91 = arith.addf %88, %90 : vector<3x96xf32>
    %cst_43 = arith.constant 0.000000e+00 : f32
    %92 = vector.broadcast %cst_43 : f32 to vector<3x96xf32>
    %93 = arith.maximumf %91, %92 : vector<3x96xf32>
    %c0_44 = arith.constant 0 : index
    %c0_45 = arith.constant 0 : index
    %94 = vector.load %arg6[%c0_44, %c0_45] : memref<96x32xf32, #tpu.memory_space<vmem>>, vector<96x32xf32>
    %cst_46 = arith.constant dense<0.000000e+00> : vector<3x32xf32>
    %95 = tpu.matmul %93, %94, %cst_46 {dimension_numbers = #tpu.dot_dimension_numbers<[1], [0], [0], [1], [0, 0, 1, 1], [], []>} : vector<3x96xf32>, vector<96x32xf32>, vector<3x32xf32> -> vector<3x32xf32>
    %c0_47 = arith.constant 0 : index
    %c0_48 = arith.constant 0 : index
    %96 = vector.load %arg7[%c0_47, %c0_48] : memref<1x32xf32, #tpu.memory_space<vmem>>, vector<1x32xf32>
    %97 = vector.broadcast %96 : vector<1x32xf32> to vector<3x32xf32>
    %98 = arith.addf %95, %97 : vector<3x32xf32>
    %cst_49 = arith.constant 5.65685415 : f32
    %99 = vector.broadcast %cst_49 : f32 to vector<3x32xf32>
    %100 = arith.mulf %98, %99 : vector<3x32xf32>
    %c0_50 = arith.constant 0 : index
    %c0_51 = arith.constant 0 : index
    %101 = vector.load %arg8[%c0_50, %c0_51] : memref<3x32xf32, #tpu.memory_space<vmem>>, vector<3x32xf32>
    %102 = arith.addf %100, %101 : vector<3x32xf32>
    %cst_52 = arith.constant dense<0.000000e+00> : vector<3xf32>
    %103 = vector.multi_reduction <add>, %102, %cst_52 [1] : vector<3x32xf32> to vector<3xf32>
    %104 = vector.shape_cast %103 : vector<3xf32> to vector<3x1xf32>
    %cst_53 = arith.constant 3.200000e+01 : f32
    %105 = vector.broadcast %cst_53 : f32 to vector<3x1xf32>
    %106 = arith.divf %104, %105 : vector<3x1xf32>
    %107 = vector.broadcast %106 : vector<3x1xf32> to vector<3x32xf32>
    %108 = arith.subf %102, %107 : vector<3x32xf32>
    %109 = arith.mulf %108, %108 : vector<3x32xf32>
    %cst_54 = arith.constant dense<0.000000e+00> : vector<3xf32>
    %110 = vector.multi_reduction <add>, %109, %cst_54 [1] : vector<3x32xf32> to vector<3xf32>
    %111 = vector.shape_cast %110 : vector<3xf32> to vector<3x1xf32>
    %cst_55 = arith.constant 3.200000e+01 : f32
    %112 = vector.broadcast %cst_55 : f32 to vector<3x1xf32>
    %113 = arith.divf %111, %112 : vector<3x1xf32>
    %114 = vector.broadcast %106 : vector<3x1xf32> to vector<3x32xf32>
    %115 = arith.subf %102, %114 : vector<3x32xf32>
    %cst_56 = arith.constant 9.99999996E-13 : f32
    %116 = vector.broadcast %cst_56 : f32 to vector<3x1xf32>
    %117 = arith.addf %113, %116 : vector<3x1xf32>
    %118 = math.rsqrt %117 : vector<3x1xf32>
    %119 = vector.broadcast %118 : vector<3x1xf32> to vector<3x32xf32>
    %120 = arith.mulf %115, %119 : vector<3x32xf32>
    %c0_57 = arith.constant 0 : index
    %c0_58 = arith.constant 0 : index
    %121 = vector.load %arg9[%c0_57, %c0_58] : memref<1x32xf32, #tpu.memory_space<vmem>>, vector<1x32xf32>
    %122 = vector.broadcast %121 : vector<1x32xf32> to vector<3x32xf32>
    %123 = arith.mulf %120, %122 : vector<3x32xf32>
    %c0_59 = arith.constant 0 : index
    %c0_60 = arith.constant 0 : index
    %124 = vector.load %arg10[%c0_59, %c0_60] : memref<1x32xf32, #tpu.memory_space<vmem>>, vector<1x32xf32>
    %125 = vector.broadcast %124 : vector<1x32xf32> to vector<3x32xf32>
    %126 = arith.addf %123, %125 : vector<3x32xf32>
    %c0_61 = arith.constant 0 : index
    %c0_62 = arith.constant 0 : index
    %c0_63 = arith.constant 0 : index
    %127 = vector.load %arg11[%c0_61, %c0_62, %c0_63] : memref<1x3x32xf32, #tpu.memory_space<vmem>>, vector<1x3x32xf32>
    %128 = vector.shape_cast %127 : vector<1x3x32xf32> to vector<3x32xf32>
    %129 = vector.shape_cast %126 : vector<3x32xf32> to vector<1x3x32xf32>
    tpu.vector_store %arg11[%c0_61, %c0_62, %c0_63], %129 {strides = array<i32>} : memref<1x3x32xf32, #tpu.memory_space<vmem>>, vector<1x3x32xf32>,
    return
  }
  func.func @transform_0(%arg0: i32) -> (i32, i32, i32) {
    %c0_i32 = arith.constant 0 : i32
    %c0_i32_0 = arith.constant 0 : i32
    %c0_i32_1 = arith.constant 0 : i32
    return %arg0, %c0_i32, %c0_i32_0 : i32, i32, i32
  }
  func.func @transform_1(%arg0: i32) -> (i32, i32, i32) {
    %c0_i32 = arith.constant 0 : i32
    %c0_i32_0 = arith.constant 0 : i32
    %c0_i32_1 = arith.constant 0 : i32
    %c0_i32_2 = arith.constant 0 : i32
    return %c0_i32, %c0_i32_0, %c0_i32_1 : i32, i32, i32
  }
  func.func @transform_2(%arg0: i32) -> (i32, i32) {
    %c0_i32 = arith.constant 0 : i32
    %c0_i32_0 = arith.constant 0 : i32
    %c0_i32_1 = arith.constant 0 : i32
    return %c0_i32, %c0_i32_0 : i32, i32
  }
  func.func @transform_3(%arg0: i32) -> (i32, i32, i32) {
    %c0_i32 = arith.constant 0 : i32
    %c0_i32_0 = arith.constant 0 : i32
    %c0_i32_1 = arith.constant 0 : i32
    %c0_i32_2 = arith.constant 0 : i32
    return %c0_i32, %c0_i32_0, %c0_i32_1 : i32, i32, i32
  }
  func.func @transform_4(%arg0: i32) -> (i32, i32) {
    %c0_i32 = arith.constant 0 : i32
    %c0_i32_0 = arith.constant 0 : i32
    %c0_i32_1 = arith.constant 0 : i32
    return %c0_i32, %c0_i32_0 : i32, i32
  }
  func.func @transform_5(%arg0: i32) -> (i32, i32) {
    %c0_i32 = arith.constant 0 : i32
    %c0_i32_0 = arith.constant 0 : i32
    %c0_i32_1 = arith.constant 0 : i32
    return %c0_i32, %c0_i32_0 : i32, i32
  }
  func.func @transform_6(%arg0: i32) -> (i32, i32) {
    %c0_i32 = arith.constant 0 : i32
    %c0_i32_0 = arith.constant 0 : i32
    %c0_i32_1 = arith.constant 0 : i32
    return %c0_i32, %c0_i32_0 : i32, i32
  }
  func.func @transform_7(%arg0: i32) -> (i32, i32) {
    %c0_i32 = arith.constant 0 : i32
    %c0_i32_0 = arith.constant 0 : i32
    %c0_i32_1 = arith.constant 0 : i32
    return %c0_i32, %c0_i32_0 : i32, i32
  }
  func.func @transform_8(%arg0: i32) -> (i32, i32) {
    %c0_i32 = arith.constant 0 : i32
    %c0_i32_0 = arith.constant 0 : i32
    %c0_i32_1 = arith.constant 0 : i32
    return %c0_i32, %c0_i32_0 : i32, i32
  }
  func.func @transform_9(%arg0: i32) -> (i32, i32) {
    %c0_i32 = arith.constant 0 : i32
    %c0_i32_0 = arith.constant 0 : i32
    %c0_i32_1 = arith.constant 0 : i32
    return %c0_i32, %c0_i32_0 : i32, i32
  }
  func.func @transform_10(%arg0: i32) -> (i32, i32, i32) {
    %c0_i32 = arith.constant 0 : i32
    %c0_i32_0 = arith.constant 0 : i32
    %c0_i32_1 = arith.constant 0 : i32
    return %arg0, %c0_i32, %c0_i32_0 : i32, i32, i32
  }
}

</mosaic_0001>

<bundles_post_ra>
// kernel: tile.13
= control target key start
LH: loop header
LB: loop body
LE: loop exit
PB: predicated region body
PF: predicated region fallthrough
CT: control target
= control target key end

     0   :  { %s22_s0 = inlined_call_operand.vmem [shape: f32[32], index: 0, kind: input, shape index: {}]   ;;  %s23_s1 = inlined_call_operand.vmem [shape: f32[7,32], index: 1, kind: output, shape index: {}]  }
   0x1   :  { %v4_v0 = vld [vmem:[%s22_s0] ss:$0 sm:$0xff] }
   0x2   :  { %5 = vst [vmem:[%s23_s1] sm:$0xff] %v4_v0 }

// kernel: tile.14
= control target key start
LH: loop header
LB: loop body
LE: loop exit
PB: predicated region body
PF: predicated region fallthrough
CT: control target
= control target key end

     0   :  { %s45_s8 = smov 96   ;;  %s20_s9 = smov 3  ;;  %vm4_vm0 = vcmask 261120   ;;  %vm10_vm1 = vcmask 1048320   ;;  %vm17_vm2 = vcmask 785920   ;;  %vm24_vm3 = vcmask 523520   ;;  %s76_s0 = inlined_call_operand.vmem [shape: f32[7,32], index: 0, kind: input, shape index: {}]   ;;  %s77_s1 = inlined_call_operand.vmem [shape: f32[1,224], index: 1, kind: output, shape index: {}]  }
   0x1   :  { %v38_v0 = vld [vmem:[%s76_s0 + $0x3] sm:$0x1]   ;;  %v40_v1 = vld [vmem:[%s76_s0 + $0x1] ss:$4 sm:%s20_s9]   ;;  %s13_s12 = smov 3  ;;  %s46_s13 = smov 32  }
   0x2   :  { %8 = vrot.lane.b32.xlu0 %v38_v0, %s45_s8  ;;  %22 = vrot.lane.b32.xlu1 %v40_v1, %s46_s13  ;;  %v39_v2 = vld [vmem:[%s76_s0 + $0x2] ss:$4 sm:%s13_s12]   ;;  %s47_s16 = smov 64   ;;  %s2_s17 = smov 3 }
   0x3   :  { %v3_v3 = vld [vmem:[%s76_s0] ss:$4 sm:%s2_s17]  }
   0x4   :  { %5 = vst.msk [vmem:[#allocation0] ss:$8 sm:$0x3] %vm4_vm0, %v3_v3  }
   0xa   :  { %15 = vrot.lane.b32.xlu0 %v39_v2, %s47_s16 }
  0x74   :  { %v9_v4 = vpop.permute.xlu0 %8   ;;  %v23_v5 = vpop.permute.xlu1 %22  }
  0x75   :  { %11 = vst.msk [vmem:[#allocation0] sm:$0x1] %vm10_vm1, %v9_v4  }
  0x7c   :  { %v16_v6 = vpop.permute.xlu0 %15  }
  0x7d   :  { %18 = vst.msk [vmem:[#allocation0] ss:$8 sm:$0x3] %vm17_vm2, %v16_v6  }
  0x7e   :  { %25 = vst.msk [vmem:[#allocation0] ss:$8 sm:$0x3] %vm24_vm3, %v23_v5  }
  0x85   :  { %v28_v7 = vld [vmem:[#allocation0] sm:$0x1]  ;;  %v33_v8 = vld [vmem:[#allocation0 + $0x8] sm:$0x1] }
  0x86   :  { %31 = vst [vmem:[%s77_s1] sm:$0x1] %v28_v7 }
  0x87   :  { %41 = vst [vmem:[%s77_s1 + $0x1] sm:$0x1] %v33_v8 }

// kernel: tile.18
= control target key start
LH: loop header
LB: loop body
LE: loop exit
PB: predicated region body
PF: predicated region fallthrough
CT: control target
= control target key end

     0   :  { %s22_s0 = inlined_call_operand.vmem [shape: f32[32], index: 0, kind: input, shape index: {}]   ;;  %s23_s1 = inlined_call_operand.vmem [shape: f32[3,32], index: 1, kind: output, shape index: {}]  }
   0x1   :  { %v4_v0 = vld [vmem:[%s22_s0] ss:$0 sm:$0xff] }
   0x2   :  { %5 = vst [vmem:[%s23_s1] sm:$0xf] %v4_v0 }

// kernel: tile.19
= control target key start
LH: loop header
LB: loop body
LE: loop exit
PB: predicated region body
PF: predicated region fallthrough
CT: control target
= control target key end

     0   :  { %s30_s8 = smov 32   ;;  %vm7_vm0 = vcmask 261120   ;;  %vm13_vm1 = vcmask 785920   ;;  %vm19_vm2 = vcmask 523520   ;;  %s47_s0 = inlined_call_operand.vmem [shape: f32[3,32], index: 0, kind: input, shape index: {}]   ;;  %s48_s1 = inlined_call_operand.vmem [shape: f32[1,96], index: 1, kind: output, shape index: {}]  }
   0x1   :  { %v4_v0 = vld [vmem:[%s47_s0] sm:$0xf]  ;;  %s29_s0 = smov 64  }
   0x2   :  { %5 = vst [vmem:[#allocation1] sm:$0xf] %v4_v0 }
   0x9   :  { %v10_v1 = vld [vmem:[#allocation1 + $0x2] sm:$0x1]   ;;  %v16_v2 = vld [vmem:[#allocation1 + $0x1] sm:$0x1]   ;;  %v6_v3 = vld [vmem:[#allocation1] sm:$0x1]  }
   0xa   :  { %11 = vrot.lane.b32.xlu0 %v10_v1, %s29_s0  ;;  %8 = vst.msk [vmem:[#allocation0] sm:$0x1] %vm7_vm0, %v6_v3  }
  0x12   :  { %17 = vrot.lane.b32.xlu0 %v16_v2, %s30_s8 }
  0x7c   :  { %v12_v4 = vpop.permute.xlu0 %11  }
  0x7d   :  { %14 = vst.msk [vmem:[#allocation0] sm:$0x1] %vm13_vm1, %v12_v4  }
  0x84   :  { %v18_v5 = vpop.permute.xlu0 %17  }
  0x85   :  { %20 = vst.msk [vmem:[#allocation0] sm:$0x1] %vm19_vm2, %v18_v5  }
  0x8c   :  { %v23_v6 = vld [vmem:[#allocation0] sm:$0x1] }
  0x8d   :  { %26 = vst [vmem:[%s48_s1] sm:$0x1] %v23_v6 }

// kernel: base_encoder_forward.1
= control target key start
LH: loop header
LB: loop body
LE: loop exit
PB: predicated region body
PF: predicated region fallthrough
CT: control target
= control target key end

     0   :  { %s1280_s13 = smov 0   ;;  %s1696_s0 = inlined_call_operand.vmem [shape: f32[2,16,16], index: 0, kind: input, shape index: {}]   ;;  %s1697_s1 = inlined_call_operand.vmem [shape: f32[3,16,224], index: 1, kind: input, shape index: {}]   ;;  %s1698_s2 = inlined_call_operand.vmem [shape: f32[1,224], index: 2, kind: input, shape index: {}]   ;;  %s1699_s3 = inlined_call_operand.vmem [shape: f32[3,224,96], index: 3, kind: input, shape index: {}]   ;;  %s1700_s4 = inlined_call_operand.vmem [shape: f32[1,96], index: 4, kind: input, shape index: {}]   ;;  %s1701_s5 = inlined_call_operand.vmem [shape: f32[96,32], index: 5, kind: input, shape index: {}]   ;;  %s1702_s6 = inlined_call_operand.vmem [shape: f32[1,32], index: 6, kind: input, shape index: {}]   ;;  %s1703_s7 = inlined_call_operand.vmem [shape: f32[3,32], index: 7, kind: input, shape index: {}]   ;;  %s1704_s8 = inlined_call_operand.vmem [shape: f32[1,32], index: 8, kind: input, shape index: {}]   ;;  %s1705_s9 = inlined_call_operand.vmem [shape: f32[1,32], index: 9, kind: input, shape index: {}]   ;;  %s1706_s10 = inlined_call_operand.vmem [shape: f32[2,3,32], index: 10, kind: output, shape index: {}]  }
   0x1 LB: > { %s1094_s14 = sadd.s32 4294967295, %s1221_s13   ;;  %p1098_p0 = scmp.ge.s32.totalorder %s1221_s13, 1  ;;  %s1221_s13 = sphi %s1280_s13, %s20_s13  }
   0x2   : > { %p312_p1 = scmp.lt.s32.totalorder %s1221_s13, 3 }
   0x4   : > { %p313_p2 = pnand %p1098_p0, %p312_p1 }
   0x5   : > { %p349_p3 = scmp.lt.s32.totalorder (!%p313_p2), %s1094_s14, 1 }
   0x6   : > { %316 = sbr.rel (%p313_p2) target bundleno = 1239 (0x4d7), region = 60 }
   0xb   : > { %v360_v0 = vlaneseq  ;;  %v395_v1 = vld [vmem:[%s1697_s1 + $0x18] sm:$0xff]  ;;  %s1708_s14 = smov (!%p349_p3, %s1094_s14), 1  ;;  %v1223_v7 = vmov 0.0   ;;  %vm368_vm1 = vcmask 130048   ;;  %v394_v10 = vld [vmem:[%s1697_s1 + $0x10] sm:$0xff]  ;;  %v392_v12 = vld [vmem:[%s1697_s1] sm:$0xff] }
   0xc   : > { %508 = vmatpush.msra.mxu1 %v395_v1  ;;  %s1196_s17 = sshll.u32 %s1708_s14, 4  ;;  %v393_v13 = vld [vmem:[%s1697_s1 + $0x8] sm:$0xff]  ;;  %v1108_v14 = vld [vmem:[%s1697_s1 + $0x30] sm:$0xff]  ;;  %v1109_v15 = vld [vmem:[%s1697_s1 + $0x38] sm:$0xff]  ;;  %vm604_vm4 = vcmask 1046528   ;;  %vm601_vm5 = vcmask 56320  }
   0xd   : > { %v361_v2 = vshrl.u32 %v360_v0, 7  ;;  %v363_v3 = vand.u32 127, %v360_v0  ;;  %s353_s20 = scalar_lea.vmem %s1696_s0, %s1196_s17  ;;  %445 = vmatpush.msra.mxu2 %v1108_v14  ;;  %465 = vmatpush.msra.mxu3 %v1109_v15  ;;  %v1106_v16 = vld [vmem:[%s1697_s1 + $0x20] sm:$0xff]  ;;  %v1107_v17 = vld [vmem:[%s1697_s1 + $0x28] sm:$0xff]  ;;  %v1118_v22 = vld [vmem:[%s1697_s1 + $0x50] sm:$0xff]  ;;  %vm750_vm6 = vcmask 785408  }
   0xe   : > { %v359_v5 = vld [vmem:[%s353_s20 + $0x8] sm:$0xff]  ;;  %v358_v6 = vld [vmem:[%s353_s20] sm:$0xff]  ;;  %509 = vmatpush.msra.mxu1 %v393_v13  ;;  %v1119_v23 = vld [vmem:[%s1697_s1 + $0x58] sm:$0xff]  ;;  %vm1000_vm7 = vcmask 256000   ;;  %s1101_s29 = sshll.u32 %s1708_s14, 2 }
   0xf   : > { %v364_v4 = vmul.u32 2, %v361_v2  ;;  %386 = vmatpush.msra.mxu0 %v359_v5  ;;  %446 = vmatpush.msra.mxu2 %v1106_v16  ;;  %v1116_v24 = vld [vmem:[%s1697_s1 + $0x40] sm:$0xff]  ;;  %v1117_v25 = vld [vmem:[%s1697_s1 + $0x48] sm:$0xff]  ;;  %v678_v40 = vld [vmem:[%s1699_s3 + $0xd8] sm:$0xff]  ;;  %s357_s16 = scalar_lea.vmem %s1706_s10, %s1101_s29 }
  0x10   : > { %466 = vmatpush.msra.mxu3 %v1107_v17  ;;  %v591_v30 = vld [vmem:[%s1698_s2] sm:$0x3]  ;;  %v1157_v42 = vld [vmem:[%s1699_s3 + $0x1b8] sm:$0xff]  ;;  %v677_v44 = vld [vmem:[%s1699_s3 + $0xd0] sm:$0xff] }
  0x11   : > { %vm365_vm0 = vcmp.eq.s32.totalorder %v363_v3, %v364_v4  ;;  %v396_v9 = vadd.s32 1, %v364_v4  ;;  %387 = vmatpush.msra.mxu0 %v358_v6  ;;  %535 = vmatpush.msrb.mxu2 %v359_v5  ;;  %v514_v19 = vadd.s32 2, %v364_v4  ;;  %v594_v33 = vperm.slane %v591_v30, 1  ;;  %v1156_v45 = vld [vmem:[%s1699_s3 + $0x1b0] sm:$0xff]  ;;  %v676_v47 = vld [vmem:[%s1699_s3 + $0xc8] sm:$0xff]  ;;  %v675_v50 = vld [vmem:[%s1699_s3 + $0xc0] sm:$0xff] }
  0x12   : > { %v1297_v8 = vsel %vm365_vm0, 1.0, %v1223_v7  ;;  %563 = vmatpush.msrb.mxu3 %v1118_v22  ;;  %v593_v39 = vperm.slane %v591_v30, 0  ;;  %v1155_v48 = vld [vmem:[%s1699_s3 + $0x1a8] sm:$0xff]  ;;  %v1154_v51 = vld [vmem:[%s1699_s3 + $0x1a0] sm:$0xff]  ;;  %v674_v52 = vld [vmem:[%s1699_s3 + $0xb8] sm:$0xff] }
  0x13   : > { %1103 = vmatmul.msk.f32.vlgmr.msra.gmra.mxu0 %vm368_vm1, %v1297_v8  ;;  %vm397_vm2 = vcmp.eq.s32.totalorder %v363_v3, %v396_v9  ;;  %536 = vmatpush.msrb.mxu2 %v358_v6  ;;  %vm515_vm3 = vcmp.eq.s32.totalorder %v363_v3, %v514_v19  ;;  %v1153_v53 = vld [vmem:[%s1699_s3 + $0x198] sm:$0xff]  ;;  %v673_v55 = vld [vmem:[%s1699_s3 + $0xb0] sm:$0xff]  ;;  %v672_v59 = vld [vmem:[%s1699_s3 + $0xa8] sm:$0xff] }
  0x14   : > { %417 = vmatpush.msrb.mxu0 %v359_v5  ;;  %v1304_v11 = vsel %vm397_vm2, 1.0, %v1223_v7  ;;  %v1330_v21 = vsel %vm515_vm3, 1.0, %v1223_v7  ;;  %564 = vmatpush.msrb.mxu3 %v1116_v24  ;;  %v666_v54 = vld [vmem:[%s1699_s3 + $0x78] sm:$0xff]  ;;  %v1152_v57 = vld [vmem:[%s1699_s3 + $0x190] sm:$0xff]  ;;  %v1151_v61 = vld [vmem:[%s1699_s3 + $0x188] sm:$0xff] }
  0x15   : > { %v1145_v56 = vld [vmem:[%s1699_s3 + $0x158] sm:$0xff]  ;;  %v665_v58 = vld [vmem:[%s1699_s3 + $0x70] sm:$0xff]  ;;  %v664_v62 = vld [vmem:[%s1699_s3 + $0x68] sm:$0xff] }
  0x16   : > { %418 = vmatpush.msrb.mxu0 %v358_v6  ;;  %v1144_v60 = vld [vmem:[%s1699_s3 + $0x150] sm:$0xff]  ;;  %v671_v63 = vld [vmem:[%s1699_s3 + $0xa0] sm:$0xff]  ;;  %v1143_v0 = vld [vmem:[%s1699_s3 + $0x148] sm:$0xff] }
  0x17   : > { %v1150_v1 = vld [vmem:[%s1699_s3 + $0x180] sm:$0xff]  ;;  %v670_v3 = vld [vmem:[%s1699_s3 + $0x98] sm:$0xff]  ;;  %v669_v7 = vld [vmem:[%s1699_s3 + $0x90] sm:$0xff] }
  0x18   : > { %488 = vmatpush.msra.mxu0 %v394_v10  ;;  %v663_v2 = vld [vmem:[%s1699_s3 + $0x60] sm:$0xff]  ;;  %v1149_v5 = vld [vmem:[%s1699_s3 + $0x178] sm:$0xff]  ;;  %v1148_v9 = vld [vmem:[%s1699_s3 + $0x170] sm:$0xff] }
  0x19   : > { %v1142_v4 = vld [vmem:[%s1699_s3 + $0x140] sm:$0xff]  ;;  %v662_v6 = vld [vmem:[%s1699_s3 + $0x58] sm:$0xff]  ;;  %v661_v10 = vld [vmem:[%s1699_s3 + $0x50] sm:$0xff] }
  0x1a   : > { %489 = vmatpush.msra.mxu0 %v392_v12  ;;  %v1140_v12 = vld [vmem:[%s1699_s3 + $0x130] sm:$0xff]  ;;  %v1147_v13 = vld [vmem:[%s1699_s3 + $0x168] sm:$0xff]  ;;  %v667_v15 = vld [vmem:[%s1699_s3 + $0x80] sm:$0xff] }
  0x1b   : > { %1105 = vmatmul.msk.f32.vlgmr.msrb.gmra.mxu0 %vm368_vm1, %v1304_v11  ;;  %v660_v14 = vld [vmem:[%s1699_s3 + $0x48] sm:$0xff]  ;;  %v1146_v17 = vld [vmem:[%s1699_s3 + $0x160] sm:$0xff]  ;;  %v1137_v22 = vld [vmem:[%s1699_s3 + $0x118] sm:$0xff] }
  0x1c   : > { %583 = vmatpush.msrb.mxu0 %v1119_v23  ;;  %v1139_v16 = vld [vmem:[%s1699_s3 + $0x128] sm:$0xff]  ;;  %v1138_v19 = vld [vmem:[%s1699_s3 + $0x120] sm:$0xff]  ;;  %v657_v23 = vld [vmem:[%s1699_s3 + $0x30] sm:$0xff] }
  0x1d   : > { %v1136_v24 = vld [vmem:[%s1699_s3 + $0x110] sm:$0xff] }
  0x1e   : > { %584 = vmatpush.msrb.mxu0 %v1117_v25  ;;  %v656_v25 = vld [vmem:[%s1699_s3 + $0x28] sm:$0xff]  ;;  %v653_v30 = vld [vmem:[%s1699_s3 + $0x10] sm:$0xff] }
  0x90   : > { %v389_v18 = vpop.f32.mrf.mxu0 }
  0x91   : > { %1112 = vmatmul.msk.f32.vlgmr.msra.gmra.mxu0 %vm368_vm1, %v389_v18  ;;  %1113 = vmatmul.msk.f32.vlgmr.msra.gmra.mxu1 %vm368_vm1, %v389_v18  ;;  %v659_v18 = vld [vmem:[%s1699_s3 + $0x40] sm:$0xff] }
  0x98   : > { %v420_v20 = vpop.f32.mrf.mxu0 }
  0x99   : > { %1110 = vmatmul.msk.f32.vlgmr.msra.gmra.mxu2 %vm368_vm1, %v420_v20  ;;  %1111 = vmatmul.msk.f32.vlgmr.msra.gmra.mxu3 %vm368_vm1, %v420_v20  ;;  %v658_v20 = vld [vmem:[%s1699_s3 + $0x38] sm:$0xff] }
  0xa1   : > { %1115 = vmatmul.msk.f32.vlgmr.msrb.gmra.mxu2 %vm368_vm1, %v1330_v21 }
 0x10e   : > { %v491_v28 = vpop.f32.mrf.mxu0  ;;  %v511_v31 = vpop.f32.mrf.mxu1 }
 0x11c   : > { %v448_v26 = vpop.f32.mrf.mxu2  ;;  %v468_v29 = vpop.f32.mrf.mxu3 }
 0x11d   : > { %v512_v32 = vadd.f32 %v511_v31, %v468_v29  ;;  %v492_v37 = vadd.f32 %v491_v28, %v448_v26  ;;  %v1135_v26 = vld [vmem:[%s1699_s3 + $0x108] sm:$0xff]  ;;  %v1134_v28 = vld [vmem:[%s1699_s3 + $0x100] sm:$0xff]  ;;  %v654_v29 = vld [vmem:[%s1699_s3 + $0x18] sm:$0xff] }
 0x11e   : > { %v1133_v31 = vld [vmem:[%s1699_s3 + $0xf8] sm:$0xff] }
 0x124   : > { %v538_v27 = vpop.f32.mrf.mxu2 }
 0x125   : > { %1120 = vmatmul.msk.f32.vlgmr.msrb.gmra.mxu3 %vm368_vm1, %v538_v27  ;;  %1121 = vmatmul.msk.f32.vlgmr.msrb.gmra.mxu0 %vm368_vm1, %v538_v27  ;;  %v655_v27 = vld [vmem:[%s1699_s3 + $0x20] sm:$0xff] }
 0x1a2   : > { %v586_v34 = vpop.f32.mrf.mxu0 }
 0x1a3   : > { %v590_v35 = vadd.f32 %v586_v34, %v512_v32  ;;  %v652_v32 = vld [vmem:[%s1699_s3 + $0x8] sm:$0xff]  ;;  %v651_v34 = vld [vmem:[%s1699_s3] sm:$0xff] }
 0x1a5   : > { %v598_v36 = vadd.f32 %v594_v33, %v590_v35  ;;  %v1132_v33 = vld [vmem:[%s1699_s3 + $0xf0] sm:$0xff]  ;;  %v1131_v35 = vld [vmem:[%s1699_s3 + $0xe8] sm:$0xff] }
 0x1a7   : > { %v1351_v38 = vmax.f32 %v598_v36, 0.0  ;;  %v1130_v36 = vld [vmem:[%s1699_s3 + $0xe0] sm:$0xff] }
 0x1a8   : > { %v566_v41 = vpop.f32.mrf.mxu3 }
 0x1a9   : > { %v589_v43 = vadd.f32 %v566_v41, %v492_v37  ;;  %1124 = vmatpush.msk.msra.mxu2 %vm604_vm4, %v1351_v38  ;;  %1128 = vmatpush.msk.msra.mxu0 %vm604_vm4, %v1351_v38  ;;  %v1179_v37 = vld [vmem:[%s1699_s3 + $0x238] sm:$0xff] }
 0x1aa   : > { %1125 = vmatmul.msk.f32.vlgmr.msra.gmra.mxu2 %vm601_vm5, %v1297_v8  ;;  %1129 = vmatmul.msk.f32.vlgmr.msra.gmra.mxu0 %vm601_vm5, %v1304_v11  ;;  %v1175_v41 = vld [vmem:[%s1699_s3 + $0x218] sm:$0xff] }
 0x1ab   : > { %821 = vmatpush.msrb.mxu0 %v678_v40  ;;  %v597_v46 = vadd.f32 %v593_v39, %v589_v43  ;;  %778 = vmatpush.msrb.mxu2 %v1157_v42  ;;  %v1177_v39 = vld [vmem:[%s1699_s3 + $0x228] sm:$0xff]  ;;  %v1176_v40 = vld [vmem:[%s1699_s3 + $0x220] sm:$0xff]  ;;  %v1174_v42 = vld [vmem:[%s1699_s3 + $0x210] sm:$0xff] }
 0x1ac   : > { %v1173_v43 = vld [vmem:[%s1699_s3 + $0x208] sm:$0xff] }
 0x1ad   : > { %822 = vmatpush.msrb.mxu0 %v677_v44  ;;  %v1379_v49 = vmax.f32 %v597_v46, 0.0  ;;  %779 = vmatpush.msrb.mxu2 %v1156_v45  ;;  %v1172_v44 = vld [vmem:[%s1699_s3 + $0x200] sm:$0xff]  ;;  %v1191_v45 = vld [vmem:[%s1699_s3 + $0x298] sm:$0xff] }
 0x1af   : > { %823 = vmatpush.msrb.mxu0 %v676_v47  ;;  %780 = vmatpush.msrb.mxu2 %v1155_v48  ;;  %v1190_v47 = vld [vmem:[%s1699_s3 + $0x290] sm:$0xff]  ;;  %v1189_v48 = vld [vmem:[%s1699_s3 + $0x288] sm:$0xff] }
 0x1b0   : > { %1122 = vmatpush.msk.msrb.mxu1 %vm604_vm4, %v1379_v49  ;;  %1126 = vmatpush.msk.msra.mxu3 %vm604_vm4, %v1379_v49 }
 0x1b1   : > { %824 = vmatpush.msrb.mxu0 %v675_v50  ;;  %1127 = vmatmul.msk.f32.vlgmr.msra.gmra.mxu3 %vm601_vm5, %v1304_v11  ;;  %v668_v11 = vld [vmem:[%s1699_s3 + $0x88] sm:$0xff]  ;;  %v1188_v50 = vld [vmem:[%s1699_s3 + $0x280] sm:$0xff] }
 0x1b2   : > { %781 = vmatpush.msrb.mxu2 %v1154_v51  ;;  %1123 = vmatmul.msk.f32.vlgmr.msrb.gmra.mxu1 %vm601_vm5, %v1297_v8  ;;  %v1141_v8 = vld [vmem:[%s1699_s3 + $0x138] sm:$0xff] }
 0x1b3   : > { %825 = vmatpush.msrb.mxu0 %v674_v52  ;;  %797 = vmatpush.msrb.mxu3 %v666_v54  ;;  %v1187_v52 = vld [vmem:[%s1699_s3 + $0x278] sm:$0xff]  ;;  %v1185_v54 = vld [vmem:[%s1699_s3 + $0x268] sm:$0xff] }
 0x1b4   : > { %782 = vmatpush.msrb.mxu2 %v1153_v53  ;;  %754 = vmatpush.msra.mxu1 %v1145_v56  ;;  %v1186_v53 = vld [vmem:[%s1699_s3 + $0x270] sm:$0xff]  ;;  %v1171_v56 = vld [vmem:[%s1699_s3 + $0x1f8] sm:$0xff] }
 0x1b5   : > { %826 = vmatpush.msrb.mxu0 %v673_v55  ;;  %798 = vmatpush.msrb.mxu3 %v665_v58  ;;  %v1170_v58 = vld [vmem:[%s1699_s3 + $0x1f0] sm:$0xff] }
 0x1b6   : > { %783 = vmatpush.msrb.mxu2 %v1152_v57  ;;  %755 = vmatpush.msra.mxu1 %v1144_v60  ;;  %v1184_v57 = vld [vmem:[%s1699_s3 + $0x260] sm:$0xff]  ;;  %v1182_v60 = vld [vmem:[%s1699_s3 + $0x250] sm:$0xff] }
 0x1b7   : > { %827 = vmatpush.msrb.mxu0 %v672_v59  ;;  %799 = vmatpush.msrb.mxu3 %v664_v62  ;;  %v1183_v59 = vld [vmem:[%s1699_s3 + $0x258] sm:$0xff]  ;;  %v1181_v62 = vld [vmem:[%s1699_s3 + $0x248] sm:$0xff] }
 0x1b8   : > { %784 = vmatpush.msrb.mxu2 %v1151_v61  ;;  %756 = vmatpush.msra.mxu1 %v1143_v0  ;;  %v1168_v61 = vld [vmem:[%s1699_s3 + $0x1e0] sm:$0xff] }
 0x1b9   : > { %828 = vmatpush.msrb.mxu0 %v671_v63  ;;  %800 = vmatpush.msrb.mxu3 %v663_v2  ;;  %v1167_v63 = vld [vmem:[%s1699_s3 + $0x1d8] sm:$0xff]  ;;  %v1180_v0 = vld [vmem:[%s1699_s3 + $0x240] sm:$0xff]  ;;  %v1165_v2 = vld [vmem:[%s1699_s3 + $0x1c8] sm:$0xff] }
 0x1ba   : > { %785 = vmatpush.msrb.mxu2 %v1150_v1  ;;  %757 = vmatpush.msra.mxu1 %v1142_v4  ;;  %v1166_v1 = vld [vmem:[%s1699_s3 + $0x1d0] sm:$0xff]  ;;  %v969_v4 = vld [vmem:[%s1701_s5 + $0x58] sm:$0xff] }
 0x1bb   : > { %829 = vmatpush.msrb.mxu0 %v670_v3  ;;  %801 = vmatpush.msrb.mxu3 %v662_v6  ;;  %v1164_v3 = vld [vmem:[%s1699_s3 + $0x1c0] sm:$0xff]  ;;  %v967_v6 = vld [vmem:[%s1701_s5 + $0x48] sm:$0xff] }
 0x1bc   : > { %786 = vmatpush.msrb.mxu2 %v1149_v5  ;;  %758 = vmatpush.msra.mxu1 %v1141_v8  ;;  %v968_v5 = vld [vmem:[%s1701_s5 + $0x50] sm:$0xff]  ;;  %v965_v8 = vld [vmem:[%s1701_s5 + $0x38] sm:$0xff] }
 0x1bd   : > { %830 = vmatpush.msrb.mxu0 %v669_v7  ;;  %802 = vmatpush.msrb.mxu3 %v661_v10  ;;  %v966_v7 = vld [vmem:[%s1701_s5 + $0x40] sm:$0xff]  ;;  %v963_v10 = vld [vmem:[%s1701_s5 + $0x28] sm:$0xff] }
 0x1be   : > { %787 = vmatpush.msrb.mxu2 %v1148_v9  ;;  %759 = vmatpush.msra.mxu1 %v1140_v12  ;;  %v964_v9 = vld [vmem:[%s1701_s5 + $0x30] sm:$0xff] }
 0x1bf   : > { %831 = vmatpush.msrb.mxu0 %v668_v11  ;;  %803 = vmatpush.msrb.mxu3 %v660_v14 }
 0x1c0   : > { %788 = vmatpush.msrb.mxu2 %v1147_v13  ;;  %760 = vmatpush.msra.mxu1 %v1139_v16 }
 0x1c1   : > { %832 = vmatpush.msrb.mxu0 %v667_v15  ;;  %804 = vmatpush.msrb.mxu3 %v659_v18 }
 0x1c2   : > { %789 = vmatpush.msrb.mxu2 %v1146_v17  ;;  %761 = vmatpush.msra.mxu1 %v1138_v19 }
 0x1c3   : > { %1162 = vmatpush.msk.msra.mxu0 %vm604_vm4, %v1351_v38  ;;  %805 = vmatpush.msrb.mxu3 %v658_v20  ;;  %v1178_v38 = vld [vmem:[%s1699_s3 + $0x230] sm:$0xff]  ;;  %v962_v20 = vld [vmem:[%s1701_s5 + $0x20] sm:$0xff] }
 0x1c4   : > { %1160 = vmatpush.msk.msra.mxu2 %vm604_vm4, %v1379_v49  ;;  %762 = vmatpush.msra.mxu1 %v1137_v22  ;;  %v961_v22 = vld [vmem:[%s1701_s5 + $0x18] sm:$0xff] }
 0x1c5   : > { %806 = vmatpush.msrb.mxu3 %v657_v23  ;;  %v960_v23 = vld [vmem:[%s1701_s5 + $0x10] sm:$0xff] }
 0x1c6   : > { %763 = vmatpush.msra.mxu1 %v1136_v24  ;;  %v959_v24 = vld [vmem:[%s1701_s5 + $0x8] sm:$0xff] }
 0x1c7   : > { %807 = vmatpush.msrb.mxu3 %v656_v25  ;;  %v958_v25 = vld [vmem:[%s1701_s5] sm:$0xff] }
 0x1c8   : > { %764 = vmatpush.msra.mxu1 %v1135_v26 }
 0x1c9   : > { %808 = vmatpush.msrb.mxu3 %v655_v27 }
 0x1ca   : > { %765 = vmatpush.msra.mxu1 %v1134_v28 }
 0x1cb   : > { %809 = vmatpush.msrb.mxu3 %v654_v29  ;;  %v1207_v29 = vld [vmem:[%s1700_s4] ss:$0 sm:$0xff] }
 0x1cc   : > { %766 = vmatpush.msra.mxu1 %v1133_v31 }
 0x1cd   : > { %810 = vmatpush.msrb.mxu3 %v653_v30 }
 0x1ce   : > { %767 = vmatpush.msra.mxu1 %v1132_v33  ;;  %v1208_v33 = vld [vmem:[%s1702_s6] ss:$0 sm:$0xff] }
 0x1cf   : > { %811 = vmatpush.msrb.mxu3 %v652_v32 }
 0x1d0   : > { %768 = vmatpush.msra.mxu1 %v1131_v35 }
 0x1d1   : > { %812 = vmatpush.msrb.mxu3 %v651_v34 }
 0x1d2   : > { %769 = vmatpush.msra.mxu1 %v1130_v36  ;;  %v998_v36 = vld [vmem:[%s1703_s7] sm:$0x7] }
 0x1d3   : > { %981 = vmatpush.msra.mxu3 %v969_v4 }
 0x1d4   : > { %911 = vmatpush.msrb.mxu1 %v1179_v37 }
 0x1d5   : > { %982 = vmatpush.msra.mxu3 %v968_v5 }
 0x1d6   : > { %912 = vmatpush.msrb.mxu1 %v1178_v38 }
 0x1d7   : > { %983 = vmatpush.msra.mxu3 %v967_v6 }
 0x1d8   : > { %913 = vmatpush.msrb.mxu1 %v1177_v39 }
 0x1d9   : > { %984 = vmatpush.msra.mxu3 %v966_v7 }
 0x1da   : > { %914 = vmatpush.msrb.mxu1 %v1176_v40  ;;  %v1224_v40 = vmov 32.0  }
 0x1db   : > { %985 = vmatpush.msra.mxu3 %v965_v8  ;;  %1211 = vrcp.f32 %v1224_v40 }
 0x1dc   : > { %915 = vmatpush.msrb.mxu1 %v1175_v41 }
 0x1dd   : > { %986 = vmatpush.msra.mxu3 %v964_v9 }
 0x1de   : > { %916 = vmatpush.msrb.mxu1 %v1174_v42 }
 0x1df   : > { %987 = vmatpush.msra.mxu3 %v963_v10 }
 0x1e0   : > { %917 = vmatpush.msrb.mxu1 %v1173_v43 }
 0x1e1   : > { %988 = vmatpush.msra.mxu3 %v962_v20  ;;  %v1212_v41 = vpop.eup %1211 }
 0x1e2   : > { %918 = vmatpush.msrb.mxu1 %v1172_v44  ;;  %v1005_v42 = vmul.f32 32.0, %v1212_v41  ;;  %vm1009_vm8 = vweird.f32 %v1212_v41 }
 0x1e3   : > { %989 = vmatpush.msra.mxu3 %v961_v22 }
 0x1e4   : > { %919 = vmatpush.msrb.mxu1 %v1171_v56  ;;  %v1006_v43 = vsub.f32 1.0, %v1005_v42 }
 0x1e5   : > { %990 = vmatpush.msra.mxu3 %v960_v23 }
 0x1e6   : > { %920 = vmatpush.msrb.mxu1 %v1170_v58  ;;  %v1007_v44 = vmul.f32 %v1212_v41, %v1006_v43 }
 0x1e7   : > { %991 = vmatpush.msra.mxu3 %v959_v24 }
 0x1e9   : > { %992 = vmatpush.msra.mxu3 %v958_v25 }
 0x227   : > { %v718_v46 = vpop.f32.mrf.mxu0 }
 0x228   : > { %1158 = vmatmul.msk.f32.vlgmr.msrb.gmra.mxu2 %vm750_vm6, %v718_v46 }
 0x229   : > { %935 = vmatpush.msrb.mxu2 %v1191_v45  ;;  %v1008_v45 = vadd.f32 %v1212_v41, %v1007_v44 }
 0x22b   : > { %936 = vmatpush.msrb.mxu2 %v1190_v47  ;;  %v1010_v46 = vsel %vm1009_vm8, %v1212_v41, %v1008_v45 }
 0x22d   : > { %v648_v49 = vpop.f32.mrf.mxu2  ;;  %937 = vmatpush.msrb.mxu2 %v1189_v48 }
 0x22e   : > { %1159 = vmatmul.msk.f32.vlgmr.msrb.gmra.mxu0 %vm750_vm6, %v648_v49 }
 0x22f   : > { %v628_v51 = vpop.f32.mrf.mxu1  ;;  %938 = vmatpush.msrb.mxu2 %v1188_v50 }
 0x230   : > { %813 = vmatmul.f32.vlgmr.msrb.gmra.mxu3 %v628_v51  ;;  %1161 = vmatmul.msk.f32.vlgmr.msra.gmra.mxu2 %vm601_vm5, %v1330_v21 }
 0x231   : > { %939 = vmatpush.msrb.mxu2 %v1187_v52 }
 0x233   : > { %940 = vmatpush.msrb.mxu2 %v1186_v53 }
 0x234   : > { %v698_v55 = vpop.f32.mrf.mxu3 }
 0x235   : > { %770 = vmatmul.f32.vlgmr.msra.gmra.mxu1 %v698_v55  ;;  %941 = vmatpush.msrb.mxu2 %v1185_v54 }
 0x236   : > { %1163 = vmatmul.msk.f32.vlgmr.msra.gmra.mxu0 %vm601_vm5, %v1330_v21  ;;  %v1169_v21 = vld [vmem:[%s1699_s3 + $0x1e8] sm:$0xff] }
 0x237   : > { %942 = vmatpush.msrb.mxu2 %v1184_v57  ;;  %921 = vmatpush.msrb.mxu1 %v1169_v21 }
 0x239   : > { %943 = vmatpush.msrb.mxu2 %v1183_v59  ;;  %922 = vmatpush.msrb.mxu1 %v1168_v61 }
 0x23b   : > { %944 = vmatpush.msrb.mxu2 %v1182_v60  ;;  %923 = vmatpush.msrb.mxu1 %v1167_v63  ;;  %v1209_v60 = vld [vmem:[%s1704_s8] ss:$0 sm:$0xff] }
 0x23d   : > { %945 = vmatpush.msrb.mxu2 %v1181_v62  ;;  %924 = vmatpush.msrb.mxu1 %v1166_v1  ;;  %v1210_v62 = vld [vmem:[%s1705_s9] ss:$0 sm:$0xff] }
 0x23f   : > { %946 = vmatpush.msrb.mxu2 %v1180_v0  ;;  %925 = vmatpush.msrb.mxu1 %v1165_v2 }
 0x241   : > { %926 = vmatpush.msrb.mxu1 %v1164_v3 }
 0x2ab   : > { %v834_v11 = vpop.f32.mrf.mxu0  ;;  %v791_v12 = vpop.f32.mrf.mxu2 }
 0x2b2   : > { %v771_v13 = vpop.f32.mrf.mxu1 }
 0x2b3   : > { %v792_v14 = vadd.f32 %v791_v12, %v771_v13  ;;  %v814_v15 = vpop.f32.mrf.mxu3  ;;  %v876_v16 = vpop.f32.mrf.mxu0 }
 0x2b4   : > { %1192 = vmatmul.msk.f32.vlgmr.msrb.gmra.mxu2 %vm750_vm6, %v876_v16  ;;  %v856_v17 = vpop.f32.mrf.mxu2 }
 0x2b5   : > { %v815_v18 = vadd.f32 %v814_v15, %v792_v14  ;;  %927 = vmatmul.f32.vlgmr.msrb.gmra.mxu1 %v856_v17 }
 0x2b7   : > { %v835_v19 = vadd.f32 %v834_v11, %v815_v18 }
 0x332   : > { %v928_v26 = vpop.f32.mrf.mxu1 }
 0x337   : > { %v948_v27 = vpop.f32.mrf.mxu2 }
 0x338   : > { %v949_v28 = vadd.f32 %v948_v27, %v928_v26 }
 0x33a   : > { %v951_v30 = vadd.f32 %v949_v28, %v835_v19 }
 0x33c   : > { %v956_v31 = vadd.f32 %v1207_v29, %v951_v30 }
 0x33e   : > { %v957_v32 = vmax.f32 %v956_v31, 0.0 }
 0x340   : > { %1193 = vmatmul.msk.f32.vlgmr.msra.gmra.mxu3 %vm750_vm6, %v957_v32 }
 0x3c3   : > { %v994_v34 = vpop.f32.mrf.mxu3 }
 0x3c4   : > { %v995_v35 = vadd.f32 %v1208_v33, %v994_v34 }
 0x3c6   : > { %v997_v37 = vmul.f32 5.656854, %v995_v35 }
 0x3c8   : > { %v999_v38 = vadd.f32 %v998_v36, %v997_v37 }
 0x3ca   : > { %v1001_v39 = vsel %vm1000_vm7, %v999_v38, 0.0 }
 0x3cb   : > { %1002 = vadd.xlane.f32.xlu0 %v1001_v39 }
 0x43e   : > { %v1003_v47 = vpop.xlane.xlu0 %1002 }
 0x43f   : > { %v1011_v48 = vmul.f32 %v1010_v46, %v1003_v47 }
 0x441   : > { %v1012_v49 = vsub.f32 %v999_v38, %v1011_v48 }
 0x443   : > { %v1013_v50 = vmul.f32 %v1012_v49, %v1012_v49 }
 0x445   : > { %v1014_v51 = vsel %vm1000_vm7, %v1013_v50, 0.0 }
 0x446   : > { %1015 = vadd.xlane.f32.xlu0 %v1014_v51 }
 0x4b9   : > { %v1016_v52 = vpop.xlane.xlu0 %1015 }
 0x4ba   : > { %v1017_v53 = vmul.f32 %v1016_v52, %v1010_v46 }
 0x4bc   : > { %v1018_v54 = vadd.f32 1e-12, %v1017_v53 }
 0x4be   : > { %1213 = vrsqrt.f32 %v1018_v54  ;;  %vm1025_vm10 = vweird.f32 %v1018_v54 }
 0x4c4   : > { %v1214_v55 = vpop.eup %1213 }
 0x4c5   : > { %v1020_v56 = vmul.f32 %v1214_v55, %v1018_v54  ;;  %vm1026_vm9 = vweird.f32 %v1214_v55 }
 0x4c6   : > { %vm1027_vm11 = vmor %vm1025_vm10, %vm1026_vm9 }
 0x4c7   : > { %v1021_v57 = vmul.f32 %v1214_v55, %v1020_v56 }
 0x4c9   : > { %v1022_v58 = vmul.f32 0.5, %v1021_v57 }
 0x4cb   : > { %v1023_v59 = vsub.f32 1.5, %v1022_v58 }
 0x4cd   : > { %v1024_v21 = vmul.f32 %v1214_v55, %v1023_v59 }
 0x4cf   : > { %v1028_v61 = vsel %vm1027_vm11, %v1214_v55, %v1024_v21 }
 0x4d0   : > { %v1029_v63 = vmul.f32 %v1028_v61, %v1012_v49 }
 0x4d2   : > { %v1034_v0 = vmul.f32 %v1209_v60, %v1029_v63 }
 0x4d4   : > { %v1039_v1 = vadd.f32 %v1210_v62, %v1034_v0 }
 0x4d6   : > { %1040 = vst.msk [vmem:[%s357_s16] sm:$0x7] %vm1000_vm7, %v1039_v1 }
 0x4d7 PF: > { %s20_s13 = sadd.s32 1, %s1221_s13  }
 0x4d8   : > { %p17_p4 = scmp.ge.s32.totalorder %s20_s13, 4  }
 0x4da   :  { %19 = sbr.rel (!%p17_p4) target bundleno = 1 (0x1), region = 94 }

</bundles_post_ra>
